<compile_context>
chip_gen: v7x
topology: tpu7x:2x2x1
jax: 0.10.0
libtpu: 0.0.40
codegen_flags: <defaults>
</compile_context>

<pallas_src>
import jax
import jax.numpy as jnp
from jax.experimental import pallas as pl
from jax.experimental.pallas import tpu as pltpu


def _round_up(x, m):
    return ((x + m - 1) // m) * m


def _gumbel_mlp_kernel(tau):
    inv_tau = 1.0 / float(tau)

    def kernel(x_ref, w1_ref, b1_ref, w2_ref, b2_ref, w3_ref, b3_ref,
               g_ref, o_ref):
        # Batch on lanes: x tile is [obs, TB]; weights are PyTorch-native
        # [out, in]; activations are [feat, TB]; everything f32.

        # Layer 1: [H1, obs] @ [obs, TB] + [H1, 1] -> [H1, TB], ReLU
        h1 = jnp.dot(w1_ref[...], x_ref[...],
                     preferred_element_type=jnp.float32) + b1_ref[...]
        h1 = jnp.maximum(h1, 0.0)

        # Layer 2: [H2, H1] @ [H1, TB] + [H2, 1] -> [H2, TB], ReLU
        h2 = jnp.dot(w2_ref[...], h1,
                     preferred_element_type=jnp.float32) + b2_ref[...]
        h2 = jnp.maximum(h2, 0.0)

        # Output layer: [A, H2] @ [H2, TB] + [A, 1] -> [A, TB]
        logits = jnp.dot(w3_ref[...], h2,
                         preferred_element_type=jnp.float32) + b3_ref[...]

        # Gumbel-softmax (soft, hard=False) over the action axis (sublanes).
        y = (logits + g_ref[...]) * inv_tau
        y = y - jnp.max(y, axis=0, keepdims=True)
        e = jnp.exp(y)
        denom = jnp.sum(e, axis=0, keepdims=True)
        # Exact division so every row sums to 1 to f32 precision.
        o_ref[...] = (e / denom).astype(o_ref.dtype)

    return kernel


def gumbel_mlp_net(x, params, gumbel_noise_t, tau=1.0, block_rows=8192):
    """Fused GumbelMlpNet forward.

    x:               [B, obs_sp] f32
    params:          (w1 [H1, obs], b1 [H1, 1], w2 [H2, H1], b2 [H2, 1],
                      w3 [A, H2],  b3 [A, 1])   -- PyTorch-native [out, in].
    gumbel_noise_t:  [A, B] f32 Gumbel(0, 1) noise (batch already on last axis).
    returns:         [B, A] f32 soft gumbel-softmax samples.
    """
    w1, b1, w2, b2, w3, b3 = params
    B, obs_sp = x.shape
    A = w3.shape[0]

    # Batch on the lane axis inside the kernel (layout plumbing in the wrapper;
    # tiny compared with the kernel's streamed traffic).
    x_t = x.T  # [obs_sp, B]

    # Batch tile: multiple of 128 lanes, large enough to amortize per-step
    # overhead; split into >=2 grid steps when the batch allows it so both
    # v7x TensorCores get work and the pipeline has something to overlap.
    if B > 128:
        n_steps = max(2, pl.cdiv(B, int(block_rows)))
        TB = _round_up(pl.cdiv(B, n_steps), 128)
    else:
        TB = 128
    grid = (pl.cdiv(B, TB),)

    # Weights / biases stay resident in VMEM across all grid steps.
    def resident(a):
        return pl.BlockSpec(a.shape, lambda i: (0,) * a.ndim)

    out_t = pl.pallas_call(
        _gumbel_mlp_kernel(tau),
        out_shape=jax.ShapeDtypeStruct((A, B), jnp.float32),
        grid=grid,
        in_specs=[
            pl.BlockSpec((obs_sp, TB), lambda i: (0, i)),   # x tile (streamed)
            resident(w1), resident(b1),
            resident(w2), resident(b2),
            resident(w3), resident(b3),
            pl.BlockSpec((A, TB), lambda i: (0, i)),        # gumbel tile (streamed)
        ],
        out_specs=pl.BlockSpec((A, TB), lambda i: (0, i)),  # lane-dense output
        compiler_params=pltpu.CompilerParams(
            dimension_semantics=("parallel",)),             # megacore on v7x
    )(x_t, w1, b1, w2, b2, w3, b3, gumbel_noise_t)

    return out_t.T  # [B, A]


def init_params(key, obs_sp, act_sp, hidden=(64, 64)):
    """Deterministic init mirroring MlpNet.reset_parameters.

    hidden_init uses fan = weight.size(0) (= out_features): hidden-layer
    weights ~ U(-1/sqrt(out), 1/sqrt(out)); output weights ~ U(-0.003, 0.003);
    biases keep the default nn.Linear range U(-1/sqrt(in), 1/sqrt(in)).
    Weights are stored PyTorch-native [out, in]; biases as [out, 1].
    """
    h1, h2 = hidden
    keys = jax.random.split(key, 6)

    lim1 = 1.0 / jnp.sqrt(jnp.float32(h1))
    w1 = jax.random.uniform(keys[0], (h1, obs_sp), jnp.float32, -lim1, lim1)
    b1 = jax.random.uniform(keys[1], (h1, 1), jnp.float32,
                            -1.0 / jnp.sqrt(jnp.float32(obs_sp)),
                            1.0 / jnp.sqrt(jnp.float32(obs_sp)))

    lim2 = 1.0 / jnp.sqrt(jnp.float32(h2))
    w2 = jax.random.uniform(keys[2], (h2, h1), jnp.float32, -lim2, lim2)
    b2 = jax.random.uniform(keys[3], (h2, 1), jnp.float32,
                            -1.0 / jnp.sqrt(jnp.float32(h1)),
                            1.0 / jnp.sqrt(jnp.float32(h1)))

    w3 = jax.random.uniform(keys[4], (act_sp, h2), jnp.float32, -0.003, 0.003)
    b3 = jax.random.uniform(keys[5], (act_sp, 1), jnp.float32,
                            -1.0 / jnp.sqrt(jnp.float32(h2)),
                            1.0 / jnp.sqrt(jnp.float32(h2)))

    return (w1, b1, w2, b2, w3, b3)


if __name__ == "__main__":
    obs_sp, act_sp, batch = 16, 8, 2
    tau = 1.0

    key = jax.random.PRNGKey(0)
    k_x, k_p, k_g = jax.random.split(key, 3)

    x = jax.random.normal(k_x, (batch, obs_sp), jnp.float32)
    params = init_params(k_p, obs_sp, act_sp)
    # Gumbel(0,1) noise, generated directly in the kernel's [act, batch] layout.
    gumbel_t = jax.random.gumbel(k_g, (act_sp, batch), jnp.float32)

    out = gumbel_mlp_net(x, params, gumbel_t, tau=tau)
    jax.block_until_ready(out)

    # Sanity: shape, non-negativity, rows of a softmax sum to 1.
    assert out.shape == (batch, act_sp)
    assert bool(jnp.all(out >= 0.0))
    assert jnp.allclose(jnp.sum(out, axis=-1), 1.0, atol=1e-3)

    # Reference check against plain-JAX forward of the same module.
    w1, b1, w2, b2, w3, b3 = params
    h1 = jnp.maximum(x @ w1.T + b1[:, 0], 0.0)
    h2 = jnp.maximum(h1 @ w2.T + b2[:, 0], 0.0)
    logits = h2 @ w3.T + b3[:, 0]
    ref = jax.nn.softmax((logits + gumbel_t.T) / tau, axis=-1)
    assert jnp.allclose(out, ref, atol=2e-3, rtol=2e-3)

    print("KERNEL_OK")
</pallas_src>

<mosaic_0001>
module attributes {stable_mosaic.version = 11 : i64} {
  func.func @kernel(%arg0: i32, %arg1: memref<16x128xf32, #tpu.memory_space<vmem>>, %arg2: memref<64x16xf32, #tpu.memory_space<vmem>>, %arg3: memref<64x1xf32, #tpu.memory_space<vmem>>, %arg4: memref<64x64xf32, #tpu.memory_space<vmem>>, %arg5: memref<64x1xf32, #tpu.memory_space<vmem>>, %arg6: memref<8x64xf32, #tpu.memory_space<vmem>>, %arg7: memref<8x1xf32, #tpu.memory_space<vmem>>, %arg8: memref<8x128xf32, #tpu.memory_space<vmem>>, %arg9: memref<8x128xf32, #tpu.memory_space<vmem>>) attributes {dimension_semantics = [#tpu.dimension_semantics<parallel>], iteration_bounds = array<i64: 1>, scalar_prefetch = 0 : i64, scratch_operands = 0 : i64, tpu.core_type = #tpu.core_type<tc>, window_params = [{transform_indices = @transform_0, window_bounds = array<i64: 16, 128>}, {pipeline_mode = #tpu.pipeline_mode<synchronous>, transform_indices = @transform_1, window_bounds = array<i64: 64, 16>}, {pipeline_mode = #tpu.pipeline_mode<synchronous>, transform_indices = @transform_2, window_bounds = array<i64: 64, 1>}, {pipeline_mode = #tpu.pipeline_mode<synchronous>, transform_indices = @transform_3, window_bounds = array<i64: 64, 64>}, {pipeline_mode = #tpu.pipeline_mode<synchronous>, transform_indices = @transform_4, window_bounds = array<i64: 64, 1>}, {pipeline_mode = #tpu.pipeline_mode<synchronous>, transform_indices = @transform_5, window_bounds = array<i64: 8, 64>}, {pipeline_mode = #tpu.pipeline_mode<synchronous>, transform_indices = @transform_6, window_bounds = array<i64: 8, 1>}, {transform_indices = @transform_7, window_bounds = array<i64: 8, 128>}, {transform_indices = @transform_8, window_bounds = array<i64: 8, 128>}]} {
    %c0 = arith.constant 0 : index
    %c0_0 = arith.constant 0 : index
    %0 = vector.load %arg2[%c0, %c0_0] : memref<64x16xf32, #tpu.memory_space<vmem>>, vector<64x16xf32>
    %c0_1 = arith.constant 0 : index
    %c0_2 = arith.constant 0 : index
    %1 = vector.load %arg1[%c0_1, %c0_2] : memref<16x128xf32, #tpu.memory_space<vmem>>, vector<16x128xf32>
    %cst = arith.constant dense<0.000000e+00> : vector<64x128xf32>
    %2 = tpu.matmul %0, %1, %cst {dimension_numbers = #tpu.dot_dimension_numbers<[1], [0], [0], [1], [0, 0, 1, 1], [], []>} : vector<64x16xf32>, vector<16x128xf32>, vector<64x128xf32> -> vector<64x128xf32>
    %c0_3 = arith.constant 0 : index
    %c0_4 = arith.constant 0 : index
    %3 = vector.load %arg3[%c0_3, %c0_4] : memref<64x1xf32, #tpu.memory_space<vmem>>, vector<64x1xf32>
    %4 = vector.broadcast %3 : vector<64x1xf32> to vector<64x128xf32>
    %5 = arith.addf %2, %4 : vector<64x128xf32>
    %cst_5 = arith.constant 0.000000e+00 : f32
    %6 = vector.broadcast %cst_5 : f32 to vector<64x128xf32>
    %7 = arith.maximumf %5, %6 : vector<64x128xf32>
    %c0_6 = arith.constant 0 : index
    %c0_7 = arith.constant 0 : index
    %8 = vector.load %arg4[%c0_6, %c0_7] : memref<64x64xf32, #tpu.memory_space<vmem>>, vector<64x64xf32>
    %cst_8 = arith.constant dense<0.000000e+00> : vector<64x128xf32>
    %9 = tpu.matmul %8, %7, %cst_8 {dimension_numbers = #tpu.dot_dimension_numbers<[1], [0], [0], [1], [0, 0, 1, 1], [], []>} : vector<64x64xf32>, vector<64x128xf32>, vector<64x128xf32> -> vector<64x128xf32>
    %c0_9 = arith.constant 0 : index
    %c0_10 = arith.constant 0 : index
    %10 = vector.load %arg5[%c0_9, %c0_10] : memref<64x1xf32, #tpu.memory_space<vmem>>, vector<64x1xf32>
    %11 = vector.broadcast %10 : vector<64x1xf32> to vector<64x128xf32>
    %12 = arith.addf %9, %11 : vector<64x128xf32>
    %cst_11 = arith.constant 0.000000e+00 : f32
    %13 = vector.broadcast %cst_11 : f32 to vector<64x128xf32>
    %14 = arith.maximumf %12, %13 : vector<64x128xf32>
    %c0_12 = arith.constant 0 : index
    %c0_13 = arith.constant 0 : index
    %15 = vector.load %arg6[%c0_12, %c0_13] : memref<8x64xf32, #tpu.memory_space<vmem>>, vector<8x64xf32>
    %cst_14 = arith.constant dense<0.000000e+00> : vector<8x128xf32>
    %16 = tpu.matmul %15, %14, %cst_14 {dimension_numbers = #tpu.dot_dimension_numbers<[1], [0], [0], [1], [0, 0, 1, 1], [], []>} : vector<8x64xf32>, vector<64x128xf32>, vector<8x128xf32> -> vector<8x128xf32>
    %c0_15 = arith.constant 0 : index
    %c0_16 = arith.constant 0 : index
    %17 = vector.load %arg7[%c0_15, %c0_16] : memref<8x1xf32, #tpu.memory_space<vmem>>, vector<8x1xf32>
    %18 = vector.broadcast %17 : vector<8x1xf32> to vector<8x128xf32>
    %19 = arith.addf %16, %18 : vector<8x128xf32>
    %c0_17 = arith.constant 0 : index
    %c0_18 = arith.constant 0 : index
    %20 = vector.load %arg8[%c0_17, %c0_18] : memref<8x128xf32, #tpu.memory_space<vmem>>, vector<8x128xf32>
    %21 = arith.addf %19, %20 : vector<8x128xf32>
    %cst_19 = arith.constant 1.000000e+00 : f32
    %22 = vector.broadcast %cst_19 : f32 to vector<8x128xf32>
    %23 = arith.mulf %21, %22 : vector<8x128xf32>
    %cst_20 = arith.constant dense<0xFF800000> : vector<128xf32>
    %24 = vector.multi_reduction <maximumf>, %23, %cst_20 [0] : vector<8x128xf32> to vector<128xf32>
    %25 = vector.shape_cast %24 : vector<128xf32> to vector<1x128xf32>
    %26 = vector.broadcast %25 : vector<1x128xf32> to vector<8x128xf32>
    %27 = arith.subf %23, %26 : vector<8x128xf32>
    %28 = math.exp %27 : vector<8x128xf32>
    %cst_21 = arith.constant dense<0.000000e+00> : vector<128xf32>
    %29 = vector.multi_reduction <add>, %28, %cst_21 [0] : vector<8x128xf32> to vector<128xf32>
    %30 = vector.shape_cast %29 : vector<128xf32> to vector<1x128xf32>
    %31 = vector.broadcast %30 : vector<1x128xf32> to vector<8x128xf32>
    %32 = arith.divf %28, %31 : vector<8x128xf32>
    %c0_22 = arith.constant 0 : index
    %c0_23 = arith.constant 0 : index
    %33 = vector.load %arg9[%c0_22, %c0_23] : memref<8x128xf32, #tpu.memory_space<vmem>>, vector<8x128xf32>
    tpu.vector_store %arg9[%c0_22, %c0_23], %32 {strides = array<i32>} : memref<8x128xf32, #tpu.memory_space<vmem>>, vector<8x128xf32>,
    return
  }
  func.func @transform_0(%arg0: i32) -> (i32, i32) {
    %c0_i32 = arith.constant 0 : i32
    %c0_i32_0 = arith.constant 0 : i32
    return %c0_i32, %arg0 : i32, i32
  }
  func.func @transform_1(%arg0: i32) -> (i32, i32) {
    %c0_i32 = arith.constant 0 : i32
    %c0_i32_0 = arith.constant 0 : i32
    %c0_i32_1 = arith.constant 0 : i32
    return %c0_i32, %c0_i32_0 : i32, i32
  }
  func.func @transform_2(%arg0: i32) -> (i32, i32) {
    %c0_i32 = arith.constant 0 : i32
    %c0_i32_0 = arith.constant 0 : i32
    %c0_i32_1 = arith.constant 0 : i32
    return %c0_i32, %c0_i32_0 : i32, i32
  }
  func.func @transform_3(%arg0: i32) -> (i32, i32) {
    %c0_i32 = arith.constant 0 : i32
    %c0_i32_0 = arith.constant 0 : i32
    %c0_i32_1 = arith.constant 0 : i32
    return %c0_i32, %c0_i32_0 : i32, i32
  }
  func.func @transform_4(%arg0: i32) -> (i32, i32) {
    %c0_i32 = arith.constant 0 : i32
    %c0_i32_0 = arith.constant 0 : i32
    %c0_i32_1 = arith.constant 0 : i32
    return %c0_i32, %c0_i32_0 : i32, i32
  }
  func.func @transform_5(%arg0: i32) -> (i32, i32) {
    %c0_i32 = arith.constant 0 : i32
    %c0_i32_0 = arith.constant 0 : i32
    %c0_i32_1 = arith.constant 0 : i32
    return %c0_i32, %c0_i32_0 : i32, i32
  }
  func.func @transform_6(%arg0: i32) -> (i32, i32) {
    %c0_i32 = arith.constant 0 : i32
    %c0_i32_0 = arith.constant 0 : i32
    %c0_i32_1 = arith.constant 0 : i32
    return %c0_i32, %c0_i32_0 : i32, i32
  }
  func.func @transform_7(%arg0: i32) -> (i32, i32) {
    %c0_i32 = arith.constant 0 : i32
    %c0_i32_0 = arith.constant 0 : i32
    return %c0_i32, %arg0 : i32, i32
  }
  func.func @transform_8(%arg0: i32) -> (i32, i32) {
    %c0_i32 = arith.constant 0 : i32
    %c0_i32_0 = arith.constant 0 : i32
    return %c0_i32, %arg0 : i32, i32
  }
}

</mosaic_0001>

<bundles_post_ra>
// kernel: tpu_custom_call.1
= control target key start
LH: loop header
LB: loop body
LE: loop exit
PB: predicated region body
PF: predicated region fallthrough
CT: control target
= control target key end

     0   :  { %vm87_vm0 = vcmask 130048   ;;  %v680_v3 = vmov 0   ;;  %vm281_vm1 = vcmask 523264   ;;  %vm682_vm2 = vmmov 0   ;;  %s860_s0 = inlined_call_operand.vmem [shape: f32[16,2], index: 0, kind: input, shape index: {}]   ;;  %s861_s1 = inlined_call_operand.vmem [shape: f32[64,16], index: 1, kind: input, shape index: {}]   ;;  %s862_s2 = inlined_call_operand.vmem [shape: f32[64,1], index: 2, kind: input, shape index: {}]   ;;  %s863_s4 = inlined_call_operand.vmem [shape: f32[64,1], index: 4, kind: input, shape index: {}]   ;;  %s864_s6 = inlined_call_operand.vmem [shape: f32[8,1], index: 6, kind: input, shape index: {}]   ;;  %s865_s3 = inlined_call_operand.vmem [shape: f32[64,64], index: 3, kind: input, shape index: {}]   ;;  %s866_s5 = inlined_call_operand.vmem [shape: f32[8,64], index: 5, kind: input, shape index: {}]   ;;  %s867_s7 = inlined_call_operand.vmem [shape: f32[8,2], index: 7, kind: input, shape index: {}]   ;;  %s868_s8 = inlined_call_operand.vmem [shape: f32[8,2], index: 8, kind: output, shape index: {}]  }
   0x1   :  { %v37_v0 = vld [vmem:[%s860_s0] sm:$0xff]  ;;  %v38_v1 = vld [vmem:[%s860_s0 + $0x8] sm:$0xff]  ;;  %674 = vset.pattern.permute.xlu0 %v680_v3  ;;  %675 = vset.pattern.permute.xlu1 %v680_v3  ;;  %v41_v7 = vld [vmem:[%s862_s2 + $0x10] sm:$0xff] }
   0x2   :  { %v29_v2 = vld [vmem:[%s861_s1] sm:$0xff]  ;;  %v638_v4 = vpack.c.bf16 %v38_v1, %v37_v0  ;;  %v30_v6 = vld [vmem:[%s861_s1 + $0x8] sm:$0xff]  ;;  %v31_v8 = vld [vmem:[%s861_s1 + $0x10] sm:$0xff]  ;;  %59 = vperm.xlu1 %675, %v41_v7  }
   0x3   :  { %579 = vmatprep.mubr.msk.f32.mxu0 %vm87_vm0, %v29_v2  ;;  %v39_v5 = vld [vmem:[%s862_s2] sm:$0xff]  ;;  %v40_v9 = vld [vmem:[%s862_s2 + $0x8] sm:$0xff]  ;;  %v42_v10 = vld [vmem:[%s862_s2 + $0x18] sm:$0xff] }
   0x4   :  { %639 = vmatprep.subr.bf16.mxu0 %v638_v4  ;;  %49 = vperm.xlu0 %674, %v39_v5   ;;  %v32_v11 = vld [vmem:[%s861_s1 + $0x18] sm:$0xff]  ;;  %v33_v12 = vld [vmem:[%s861_s1 + $0x20] sm:$0xff]  ;;  %v44_v14 = vld [vmem:[%s862_s2 + $0x28] sm:$0xff] }
   0x5   :  { %641 = vmatpush3.bf16.msra.mxu0 %v638_v4  ;;  %v43_v13 = vld [vmem:[%s862_s2 + $0x20] sm:$0xff]  ;;  %v34_v15 = vld [vmem:[%s861_s1 + $0x28] sm:$0xff]  ;;  %v35_v16 = vld [vmem:[%s861_s1 + $0x30] sm:$0xff] }
   0x6   :  { %64 = vperm.xlu1 %675, %v42_v10   ;;  %v45_v17 = vld [vmem:[%s862_s2 + $0x30] sm:$0xff]  ;;  %v46_v18 = vld [vmem:[%s862_s2 + $0x38] sm:$0xff]  ;;  %v233_v20 = vld [vmem:[%s863_s4] sm:$0xff]  ;;  %v683_v10 = vmov 0.0  }
   0x7   :  { %v36_v19 = vld [vmem:[%s861_s1 + $0x38] sm:$0xff]  ;;  %v234_v21 = vld [vmem:[%s863_s4 + $0x8] sm:$0xff]  ;;  %v235_v22 = vld [vmem:[%s863_s4 + $0x10] sm:$0xff] }
   0x8   :  { %580 = vmatmul.mubr.msk.f32.vlgmr.msra.gmra.mrb[0].mxu0 %vm87_vm0, %v30_v6  ;;  %54 = vperm.xlu0 %674, %v40_v9   ;;  %v236_v23 = vld [vmem:[%s863_s4 + $0x18] sm:$0xff]  ;;  %v237_v24 = vld [vmem:[%s863_s4 + $0x20] sm:$0xff]  ;;  %v238_v25 = vld [vmem:[%s863_s4 + $0x28] sm:$0xff]  ;;  %v681_v9 = vmov 0.0|0.0  }
   0x9   :  { %582 = vmatprep.mubr.msk.f32.mxu0 %vm87_vm0, %v31_v8  ;;  %v239_v26 = vld [vmem:[%s863_s4 + $0x30] sm:$0xff]  ;;  %v240_v27 = vld [vmem:[%s863_s4 + $0x38] sm:$0xff]  ;;  %v420_v28 = vld [vmem:[%s864_s6] sm:$0xff]  ;;  %658 = vmatprep.subr.bf16.mxu0 %v681_v9 }
   0xa   :  { %74 = vperm.xlu1 %675, %v44_v14   ;;  %v225_v29 = vld [vmem:[%s865_s3] sm:$0xff]  ;;  %v226_v2 = vld [vmem:[%s865_s3 + $0x8] sm:$0xff]  ;;  %v227_v3 = vld [vmem:[%s865_s3 + $0x10] sm:$0xff] }
   0xb   :  { %607 = vmatprep.mubr.msk.f32.mxu1 %vm281_vm1, %v225_v29  ;;  %v228_v4 = vld [vmem:[%s865_s3 + $0x18] sm:$0xff]  ;;  %v229_v5 = vld [vmem:[%s865_s3 + $0x20] sm:$0xff]  ;;  %v230_v6 = vld [vmem:[%s865_s3 + $0x28] sm:$0xff] }
   0xc   :  { %583 = vmatmul.mubr.msk.f32.gmra.mrb[2].mxu0 %vm87_vm0, %v32_v11  ;;  %69 = vperm.xlu0 %674, %v43_v13   ;;  %v231_v7 = vld [vmem:[%s865_s3 + $0x30] sm:$0xff]  ;;  %v232_v8 = vld [vmem:[%s865_s3 + $0x38] sm:$0xff] }
   0xd   :  { %585 = vmatprep.mubr.msk.f32.mxu0 %vm87_vm0, %v33_v12 }
   0xe   :  { %84 = vperm.xlu1 %675, %v46_v18  }
  0x10   :  { %586 = vmatmul.mubr.msk.f32.gmra.mrb[4].mxu0 %vm87_vm0, %v34_v15  ;;  %79 = vperm.xlu0 %674, %v45_v17  }
  0x11   :  { %588 = vmatprep.mubr.msk.f32.mxu0 %vm87_vm0, %v35_v16 }
  0x12   :  { %248 = vperm.xlu1 %675, %v234_v21  }
  0x14   :  { %589 = vmatmul.mubr.msk.f32.gmra.mrb[6].mxu0 %vm87_vm0, %v36_v19  ;;  %243 = vperm.xlu0 %674, %v233_v20  }
  0x15   :  { %635 = vmatprep.mubr.msk.f32.mxu0 %vm682_vm2, %v683_v10 }
  0x16   :  { %258 = vperm.xlu1 %675, %v236_v23  }
  0x18   :  { %253 = vperm.xlu0 %674, %v235_v22  }
  0x1a   :  { %268 = vperm.xlu1 %675, %v238_v25  }
  0x1c   :  { %263 = vperm.xlu0 %674, %v237_v24  }
  0x1e   :  { %278 = vperm.xlu1 %675, %v240_v27  }
  0x20   :  { %273 = vperm.xlu0 %674, %v239_v26  }
  0x24   :  { %423 = vperm.xlu0 %674, %v420_v28  }
  0x81   :  { %v60_v31 = vpop.permute.xlu1 %59 }
  0x83   :  { %v50_v30 = vpop.permute.xlu0 %49 }
  0x85   :  { %v65_v33 = vpop.permute.xlu1 %64 }
  0x87   :  { %v55_v32 = vpop.permute.xlu0 %54 }
  0x89   :  { %v75_v43 = vpop.permute.xlu1 %74 }
  0x8b   :  { %v70_v46 = vpop.permute.xlu0 %69 }
  0x8d   :  { %v85_v55 = vpop.permute.xlu1 %84 }
  0x8f   :  { %v80_v58 = vpop.permute.xlu0 %79 }
  0x91   :  { %v249_v11 = vpop.permute.xlu1 %248 }
  0x93   :  { %v244_v12 = vpop.permute.xlu0 %243 }
  0x95   :  { %v259_v13 = vpop.permute.xlu1 %258 }
  0x97   :  { %v254_v15 = vpop.permute.xlu0 %253 }
  0x99   :  { %v269_v24 = vpop.permute.xlu1 %268 }
  0x9b   :  { %v264_v27 = vpop.permute.xlu0 %263 }
  0xdb   :  { %v581_v34 = vpop.f32.mrb[0].mxu0 }
  0xdc   :  { %v184_v35 = vadd.f32 %v581_v34, %v55_v32  ;;  %v178_v36 = vpop.f32.mrb[1].mxu0 }
  0xdd   :  { %v179_v37 = vadd.f32 %v178_v36, %v50_v30  ;;  %v279_v36 = vpop.permute.xlu1 %278 }
  0xde   :  { %v218_v38 = vmax.f32 %v184_v35, 0.0 }
  0xdf   :  { %v217_v39 = vmax.f32 %v179_v37, 0.0  ;;  %v584_v40 = vpop.f32.mrb[2].mxu0 }
  0xe0   :  { %v194_v41 = vadd.f32 %v584_v40, %v65_v33  ;;  %v188_v42 = vpop.f32.mrb[3].mxu0 }
  0xe1   :  { %v189_v44 = vadd.f32 %v188_v42, %v60_v31  ;;  %v642_v45 = vpack.c.bf16 %v218_v38, %v217_v39  ;;  %v274_v39 = vpop.permute.xlu0 %273 }
  0xe2   :  { %v220_v47 = vmax.f32 %v194_v41, 0.0 }
  0xe3   :  { %v219_v48 = vmax.f32 %v189_v44, 0.0  ;;  %v587_v49 = vpop.f32.mrb[4].mxu0  ;;  %643 = vmatprep.subr.bf16.mxu1 %v642_v45 }
  0xe4   :  { %v204_v50 = vadd.f32 %v587_v49, %v75_v43  ;;  %v198_v51 = vpop.f32.mrb[5].mxu0  ;;  %645 = vmatpush3.bf16.msra.mxu1 %v642_v45 }
  0xe5   :  { %v646_v52 = vpack.c.bf16 %v220_v47, %v219_v48  ;;  %v199_v53 = vadd.f32 %v198_v51, %v70_v46  ;;  %v419_v47 = vld [vmem:[%s866_s5] sm:$0xff]  ;;  %v424_v48 = vpop.permute.xlu0 %423 }
  0xe6   :  { %v222_v54 = vmax.f32 %v204_v50, 0.0  ;;  %v499_v50 = vld [vmem:[%s867_s7] sm:$0xff] }
  0xe7   :  { %v221_v56 = vmax.f32 %v199_v53, 0.0  ;;  %v590_v57 = vpop.f32.mrb[6].mxu0  ;;  %647 = vmatprep.subr.bf16.mxu1 %v646_v52 }
  0xe8   :  { %v214_v59 = vadd.f32 %v590_v57, %v85_v55  ;;  %v208_v60 = vpop.f32.mrb[7].mxu0  ;;  %649 = vmatpush3.bf16.msra.mxu1 %v646_v52 }
  0xe9   :  { %v650_v61 = vpack.c.bf16 %v222_v54, %v221_v56  ;;  %v209_v62 = vadd.f32 %v208_v60, %v80_v58 }
  0xea   :  { %v224_v63 = vmax.f32 %v214_v59, 0.0 }
  0xeb   :  { %v223_v0 = vmax.f32 %v209_v62, 0.0  ;;  %651 = vmatprep.subr.bf16.mxu1 %v650_v61 }
  0xec   :  { %653 = vmatpush3.bf16.msra.mxu1 %v650_v61 }
  0xed   :  { %v654_v1 = vpack.c.bf16 %v224_v63, %v223_v0 }
  0xef   :  { %655 = vmatprep.subr.bf16.mxu1 %v654_v1 }
  0xf0   :  { %657 = vmatpush3.bf16.msra.mxu1 %v654_v1 }
  0xf3   :  { %608 = vmatmul.mubr.msk.f32.vlgmr.msra.gmra.mrb[0].mxu1 %vm281_vm1, %v226_v2 }
  0xf4   :  { %610 = vmatprep.mubr.msk.f32.mxu1 %vm281_vm1, %v227_v3 }
  0xf7   :  { %611 = vmatmul.mubr.msk.f32.gmra.mrb[2].mxu1 %vm281_vm1, %v228_v4 }
  0xf8   :  { %613 = vmatprep.mubr.msk.f32.mxu1 %vm281_vm1, %v229_v5 }
  0xfb   :  { %614 = vmatmul.mubr.msk.f32.gmra.mrb[4].mxu1 %vm281_vm1, %v230_v6 }
  0xfc   :  { %616 = vmatprep.mubr.msk.f32.mxu1 %vm281_vm1, %v231_v7 }
  0xff   :  { %617 = vmatmul.mubr.msk.f32.gmra.mrb[6].mxu1 %vm281_vm1, %v232_v8 }
 0x1c6   :  { %v609_v14 = vpop.f32.mrb[0].mxu1 }
 0x1c7   :  { %v378_v16 = vadd.f32 %v609_v14, %v249_v11  ;;  %v372_v17 = vpop.f32.mrb[1].mxu1 }
 0x1c8   :  { %v373_v18 = vadd.f32 %v372_v17, %v244_v12 }
 0x1c9   :  { %v412_v19 = vmax.f32 %v378_v16, 0.0 }
 0x1ca   :  { %v411_v20 = vmax.f32 %v373_v18, 0.0  ;;  %v612_v21 = vpop.f32.mrb[2].mxu1 }
 0x1cb   :  { %v388_v22 = vadd.f32 %v612_v21, %v259_v13  ;;  %v382_v23 = vpop.f32.mrb[3].mxu1 }
 0x1cc   :  { %v659_v25 = vpack.c.bf16 %v412_v19, %v411_v20  ;;  %v383_v26 = vadd.f32 %v382_v23, %v254_v15 }
 0x1cd   :  { %v414_v28 = vmax.f32 %v388_v22, 0.0 }
 0x1ce   :  { %v413_v29 = vmax.f32 %v383_v26, 0.0  ;;  %v615_v30 = vpop.f32.mrb[4].mxu1  ;;  %660 = vmatpush3.bf16.msra.mxu0 %v659_v25 }
 0x1cf   :  { %v398_v31 = vadd.f32 %v615_v30, %v269_v24  ;;  %v392_v32 = vpop.f32.mrb[5].mxu1  ;;  %661 = vmatprep.subr.bf16.mxu0 %v681_v9 }
 0x1d0   :  { %v662_v33 = vpack.c.bf16 %v414_v28, %v413_v29  ;;  %v393_v34 = vadd.f32 %v392_v32, %v264_v27 }
 0x1d1   :  { %v416_v35 = vmax.f32 %v398_v31, 0.0 }
 0x1d2   :  { %v415_v37 = vmax.f32 %v393_v34, 0.0  ;;  %v618_v38 = vpop.f32.mrb[6].mxu1  ;;  %663 = vmatpush3.bf16.msra.mxu0 %v662_v33 }
 0x1d3   :  { %v408_v40 = vadd.f32 %v618_v38, %v279_v36  ;;  %v402_v41 = vpop.f32.mrb[7].mxu1  ;;  %664 = vmatprep.subr.bf16.mxu0 %v681_v9 }
 0x1d4   :  { %v665_v42 = vpack.c.bf16 %v416_v35, %v415_v37  ;;  %v403_v43 = vadd.f32 %v402_v41, %v274_v39 }
 0x1d5   :  { %v418_v44 = vmax.f32 %v408_v40, 0.0 }
 0x1d6   :  { %v417_v45 = vmax.f32 %v403_v43, 0.0  ;;  %666 = vmatpush3.bf16.msra.mxu0 %v665_v42 }
 0x1d7   :  { %667 = vmatprep.subr.bf16.mxu0 %v681_v9 }
 0x1d8   :  { %v668_v46 = vpack.c.bf16 %v418_v44, %v417_v45 }
 0x1da   :  { %669 = vmatpush3.bf16.msra.mxu0 %v668_v46 }
 0x1dd   :  { %636 = vmatmul.mubr.msk.f32.vlgmr.msra.gmra.mrb[8].mxu0 %vm281_vm1, %v419_v47 }
 0x2b0   :  { %v495_v49 = vpop.f32.mrb[8].mxu0 }
 0x2b1   :  { %v496_v51 = vadd.f32 %v495_v49, %v424_v48  ;;  %v637_v52 = vpop.f32.mrb[9].mxu0 }
 0x2b3   :  { %v500_v53 = vadd.f32 %v499_v50, %v496_v51 }
 0x2b5   :  { %v501_v54 = vrot.slane %v500_v53, 4 }
 0x2b7   :  { %v502_v55 = vmax.f32 %v500_v53, %v501_v54 }
 0x2b9   :  { %v503_v56 = vrot.slane %v502_v55, 2 }
 0x2bb   :  { %v504_v57 = vmax.f32 %v502_v55, %v503_v56 }
 0x2bd   :  { %v505_v58 = vrot.slane %v504_v57, 1 }
 0x2bf   :  { %v506_v59 = vmax.f32 %v504_v57, %v505_v58 }
 0x2c1   :  { %v507_v60 = vsub.f32 %v500_v53, %v506_v59 }
 0x2c3   :  { %v508_v61 = vmul.f32 1.442695, %v507_v60 }
 0x2c5   :  { %676 = vpow2.f32 %v508_v61 }
 0x2cf   :  { %v677_v62 = vpop.eup %676 }
 0x2d0   :  { %v510_v63 = vrot.slane %v677_v62, 4 }
 0x2d2   :  { %v511_v0 = vadd.f32 %v677_v62, %v510_v63 }
 0x2d4   :  { %v512_v1 = vrot.slane %v511_v0, 2 }
 0x2d6   :  { %v513_v2 = vadd.f32 %v512_v1, %v511_v0 }
 0x2d8   :  { %v514_v3 = vrot.slane %v513_v2, 1 }
 0x2da   :  { %v515_v4 = vadd.f32 %v514_v3, %v513_v2 }
 0x2dc   :  { %678 = vrcp.f32 %v515_v4 }
 0x2e6   :  { %v679_v5 = vpop.eup %678 }
 0x2e7   :  { %v517_v6 = vmul.f32 %v679_v5, %v677_v62 }
 0x2e9   :  { %518 = vst [vmem:[%s868_s8] sm:$0xff] %v517_v6 }

</bundles_post_ra>
